<compile_context>
chip_gen: v7x
topology: tpu7x:2x2x1
jax: 0.10.0
libtpu: 0.0.40
codegen_flags: <defaults>
</compile_context>

<pallas_src>
import functools

import jax
import jax.numpy as jnp
from jax.experimental import pallas as pl
from jax.experimental.pallas import tpu as pltpu

EPS = 1e-5
LANES = 128


def _bn_stats_kernel(params_ref, x_ref, stats_ref, *, fin, hid):
    """Pass 1: per-tile partial sum / sum-of-squares of h = x @ w1 (b1 cancels).

    params_ref: SMEM f32[fin*hid]             w1 row-major (w1[j,k] at j*hid+k)
    x_ref:      VMEM [fin, tile_rows, 128]    batch on (sublane, lane)
    stats_ref:  VMEM [1, 2*hid, 128]          rows 0..H-1 = sum(h), H..2H-1 = sum(h*h)
    """
    x = [x_ref[j].astype(jnp.float32) for j in range(fin)]
    sum_rows, sq_rows = [], []
    for k in range(hid):
        h = x[0] * params_ref[k]
        for j in range(1, fin):
            h = h + x[j] * params_ref[j * hid + k]
        sum_rows.append(jnp.sum(h, axis=0, keepdims=True))          # [1, 128]
        sq_rows.append(jnp.sum(h * h, axis=0, keepdims=True))       # [1, 128]
    stats_ref[0] = jnp.concatenate(sum_rows + sq_rows, axis=0)      # [2H, 128]


def _bn_apply_kernel(params_ref, x_ref, out_ref, *, fin, hid, out):
    """Pass 2: out = tanh((x @ w1) * scale + shift) @ w2 + b2 for one batch tile.

    params_ref: SMEM f32[fin*hid + 2*hid + hid*out + out] = [w1|scale|shift|w2|b2]
    x_ref:      VMEM [fin, tile_rows, 128]
    out_ref:    VMEM [out, tile_rows, 128]   (lane-dense output planes)
    """
    w1_off = 0
    sc_off = fin * hid
    sh_off = sc_off + hid
    w2_off = sh_off + hid
    b2_off = w2_off + hid * out

    x = [x_ref[j].astype(jnp.float32) for j in range(fin)]
    accs = [None] * out
    for k in range(hid):
        h = x[0] * params_ref[w1_off + k]
        for j in range(1, fin):
            h = h + x[j] * params_ref[w1_off + j * hid + k]
        p = jnp.tanh(h * params_ref[sc_off + k] + params_ref[sh_off + k])  # EUP
        for o in range(out):
            t = p * params_ref[w2_off + k * out + o]
            accs[o] = t if accs[o] is None else accs[o] + t
    for o in range(out):
        out_ref[o] = (accs[o] + params_ref[b2_off + o]).astype(out_ref.dtype)


def tanh_class1_norm1_forward(x, w1, b1, gamma, beta, w2, b2, *, tile_rows=32):
    """x: [B, Fin]; w1: [Fin, H]; b1/gamma/beta: [H]; w2: [H, Out]; b2: [Out]."""
    del b1  # exactly cancelled by the training-mode batch-mean subtraction
    B, Fin = x.shape
    H = w1.shape[1]
    Out = w2.shape[1]

    # ---- batch tiling: batch lives on (sublane, lane) = (rows, 128) ----------
    rows = -(-B // LANES)
    if rows <= tile_rows:
        tile_rows = rows                       # single tile: any row count OK
    else:
        tile_rows = max(8, (tile_rows // 8) * 8)   # multi-tile: sublane-aligned
    n_tiles = -(-rows // tile_rows)
    rows_pad = n_tiles * tile_rows
    b_pad = rows_pad * LANES

    # TODO(synk): remove this transpose (see header); padding columns are zeros,
    # which contribute 0 to sum/sumsq since b1 is dropped.
    x_t = jnp.swapaxes(x, 0, 1)                            # [Fin, B], native dtype
    if b_pad != B:
        x_t = jnp.pad(x_t, ((0, 0), (0, b_pad - B)))
    x3 = x_t.reshape(Fin, rows_pad, LANES)                 # free contiguous reshape

    w1_flat = w1.reshape(-1).astype(jnp.float32)           # w1[j,k] at j*H + k

    # ------------------------------ pass 1: stats -----------------------------
    stats_tiles = pl.pallas_call(
        functools.partial(_bn_stats_kernel, fin=Fin, hid=H),
        out_shape=jax.ShapeDtypeStruct((n_tiles, 2 * H, LANES), jnp.float32),
        grid=(n_tiles,),
        in_specs=[
            pl.BlockSpec(memory_space=pltpu.MemorySpace.SMEM),
            pl.BlockSpec((Fin, tile_rows, LANES), lambda i: (0, i, 0)),
        ],
        out_specs=pl.BlockSpec((1, 2 * H, LANES), lambda i: (i, 0, 0)),
        compiler_params=pltpu.CompilerParams(
            dimension_semantics=("parallel",)),
        cost_estimate=pl.CostEstimate(
            flops=b_pad * H * (2 * Fin + 3),
            transcendentals=0,
            bytes_accessed=int(x3.dtype.itemsize) * Fin * b_pad
            + 4 * (n_tiles * 2 * H * LANES + Fin * H)),
    )(w1_flat, x3)

    # Tiny [H]-sized reduction + BN fold in plain XLA (var = E[h^2] - mean^2).
    sums = jnp.sum(stats_tiles, axis=(0, 2))                       # [2H]
    mean = sums[:H] / B                                            # true B
    var = jnp.maximum(sums[H:] / B - mean * mean, 0.0)             # biased var
    scale = gamma.astype(jnp.float32) * jax.lax.rsqrt(var + EPS)
    shift = beta.astype(jnp.float32) - mean * scale

    apply_params = jnp.concatenate([
        w1_flat, scale, shift,
        w2.reshape(-1).astype(jnp.float32),                        # w2[k,o] at k*Out+o
        b2.reshape(-1).astype(jnp.float32)])

    # ------------------------------ pass 2: apply -----------------------------
    out3 = pl.pallas_call(
        functools.partial(_bn_apply_kernel, fin=Fin, hid=H, out=Out),
        out_shape=jax.ShapeDtypeStruct((Out, rows_pad, LANES), x.dtype),
        grid=(n_tiles,),
        in_specs=[
            pl.BlockSpec(memory_space=pltpu.MemorySpace.SMEM),
            pl.BlockSpec((Fin, tile_rows, LANES), lambda i: (0, i, 0)),
        ],
        out_specs=pl.BlockSpec((Out, tile_rows, LANES), lambda i: (0, i, 0)),
        compiler_params=pltpu.CompilerParams(
            dimension_semantics=("parallel",)),
        cost_estimate=pl.CostEstimate(
            flops=b_pad * (2 * Fin * H + 2 * H + 2 * H * Out),
            transcendentals=b_pad * H,
            bytes_accessed=int(x3.dtype.itemsize) * Fin * b_pad
            + int(x.dtype.itemsize) * Out * b_pad
            + 4 * int(apply_params.shape[0])),
    )(apply_params, x3)

    # Back to the PyTorch layout [B, Out] ([Out, B] -> [B, Out] is a layout no-op).
    return out3.reshape(Out, b_pad)[:, :B].T


def reference_forward(x, w1, b1, gamma, beta, w2, b2):
    h = x @ w1 + b1
    mean = h.mean(axis=0)
    var = ((h - mean) ** 2).mean(axis=0)
    z = (h - mean) / jnp.sqrt(var + EPS) * gamma + beta
    return jnp.tanh(z) @ w2 + b2


if __name__ == "__main__":
    in_features, n_hidden, out_features = 2, 4, 1
    batch = 8

    key = jax.random.PRNGKey(0)
    kx, kw1, kb1, kw2, kb2 = jax.random.split(key, 5)

    x = jax.random.normal(kx, (batch, in_features), dtype=jnp.float32)

    # Deterministic parameter init (synthetic; matches nn.Linear / BatchNorm1d shapes).
    w1 = jax.random.normal(kw1, (in_features, n_hidden), dtype=jnp.float32) * 0.5
    b1 = jax.random.normal(kb1, (n_hidden,), dtype=jnp.float32) * 0.1
    gamma = jnp.ones((n_hidden,), dtype=jnp.float32)   # BatchNorm1d weight init
    beta = jnp.zeros((n_hidden,), dtype=jnp.float32)   # BatchNorm1d bias init
    w2 = jax.random.normal(kw2, (n_hidden, out_features), dtype=jnp.float32) * 0.5
    b2 = jax.random.normal(kb2, (out_features,), dtype=jnp.float32) * 0.1

    out = tanh_class1_norm1_forward(x, w1, b1, gamma, beta, w2, b2)
    out = jax.block_until_ready(out)

    ref = reference_forward(x, w1, b1, gamma, beta, w2, b2)
    assert out.shape == (batch, out_features)
    assert jnp.allclose(out, ref, atol=1e-5, rtol=1e-5), (out, ref)

    print("KERNEL_OK")
</pallas_src>

<mosaic_0001>
module attributes {stable_mosaic.version = 11 : i64} {
  func.func @_bn_stats_kernel(%arg0: i32, %arg1: memref<8xf32, #tpu.memory_space<smem>>, %arg2: memref<2x1x128xf32, #tpu.memory_space<vmem>>, %arg3: memref<1x8x128xf32, #tpu.memory_space<vmem>>) attributes {dimension_semantics = [#tpu.dimension_semantics<parallel>], iteration_bounds = array<i64: 1>, scalar_prefetch = 0 : i64, scratch_operands = 0 : i64, tpu.core_type = #tpu.core_type<tc>, window_params = [{transform_indices = @transform_0, window_bounds = array<i64: 8>}, {transform_indices = @transform_1, window_bounds = array<i64: 2, 1, 128>}, {transform_indices = @transform_2, window_bounds = array<i64: 1, 8, 128>}]} {
    %c0 = arith.constant 0 : index
    %c0_0 = arith.constant 0 : index
    %c0_1 = arith.constant 0 : index
    %0 = vector.load %arg2[%c0, %c0_0, %c0_1] : memref<2x1x128xf32, #tpu.memory_space<vmem>>, vector<1x1x128xf32>
    %1 = vector.shape_cast %0 : vector<1x1x128xf32> to vector<1x128xf32>
    %c1 = arith.constant 1 : index
    %c0_2 = arith.constant 0 : index
    %c0_3 = arith.constant 0 : index
    %2 = vector.load %arg2[%c1, %c0_2, %c0_3] : memref<2x1x128xf32, #tpu.memory_space<vmem>>, vector<1x1x128xf32>
    %3 = vector.shape_cast %2 : vector<1x1x128xf32> to vector<1x128xf32>
    %c0_4 = arith.constant 0 : index
    %4 = memref.load %arg1[%c0_4] : memref<8xf32, #tpu.memory_space<smem>>
    %5 = vector.broadcast %4 : f32 to vector<1x128xf32>
    %6 = arith.mulf %1, %5 : vector<1x128xf32>
    %c4 = arith.constant 4 : index
    %7 = memref.load %arg1[%c4] : memref<8xf32, #tpu.memory_space<smem>>
    %8 = vector.broadcast %7 : f32 to vector<1x128xf32>
    %9 = arith.mulf %3, %8 : vector<1x128xf32>
    %10 = arith.addf %6, %9 : vector<1x128xf32>
    %cst = arith.constant dense<0.000000e+00> : vector<128xf32>
    %11 = vector.multi_reduction <add>, %10, %cst [0] : vector<1x128xf32> to vector<128xf32>
    %12 = vector.shape_cast %11 : vector<128xf32> to vector<1x128xf32>
    %13 = arith.mulf %10, %10 : vector<1x128xf32>
    %cst_5 = arith.constant dense<0.000000e+00> : vector<128xf32>
    %14 = vector.multi_reduction <add>, %13, %cst_5 [0] : vector<1x128xf32> to vector<128xf32>
    %15 = vector.shape_cast %14 : vector<128xf32> to vector<1x128xf32>
    %c1_6 = arith.constant 1 : index
    %16 = memref.load %arg1[%c1_6] : memref<8xf32, #tpu.memory_space<smem>>
    %17 = vector.broadcast %16 : f32 to vector<1x128xf32>
    %18 = arith.mulf %1, %17 : vector<1x128xf32>
    %c5 = arith.constant 5 : index
    %19 = memref.load %arg1[%c5] : memref<8xf32, #tpu.memory_space<smem>>
    %20 = vector.broadcast %19 : f32 to vector<1x128xf32>
    %21 = arith.mulf %3, %20 : vector<1x128xf32>
    %22 = arith.addf %18, %21 : vector<1x128xf32>
    %cst_7 = arith.constant dense<0.000000e+00> : vector<128xf32>
    %23 = vector.multi_reduction <add>, %22, %cst_7 [0] : vector<1x128xf32> to vector<128xf32>
    %24 = vector.shape_cast %23 : vector<128xf32> to vector<1x128xf32>
    %25 = arith.mulf %22, %22 : vector<1x128xf32>
    %cst_8 = arith.constant dense<0.000000e+00> : vector<128xf32>
    %26 = vector.multi_reduction <add>, %25, %cst_8 [0] : vector<1x128xf32> to vector<128xf32>
    %27 = vector.shape_cast %26 : vector<128xf32> to vector<1x128xf32>
    %c2 = arith.constant 2 : index
    %28 = memref.load %arg1[%c2] : memref<8xf32, #tpu.memory_space<smem>>
    %29 = vector.broadcast %28 : f32 to vector<1x128xf32>
    %30 = arith.mulf %1, %29 : vector<1x128xf32>
    %c6 = arith.constant 6 : index
    %31 = memref.load %arg1[%c6] : memref<8xf32, #tpu.memory_space<smem>>
    %32 = vector.broadcast %31 : f32 to vector<1x128xf32>
    %33 = arith.mulf %3, %32 : vector<1x128xf32>
    %34 = arith.addf %30, %33 : vector<1x128xf32>
    %cst_9 = arith.constant dense<0.000000e+00> : vector<128xf32>
    %35 = vector.multi_reduction <add>, %34, %cst_9 [0] : vector<1x128xf32> to vector<128xf32>
    %36 = vector.shape_cast %35 : vector<128xf32> to vector<1x128xf32>
    %37 = arith.mulf %34, %34 : vector<1x128xf32>
    %cst_10 = arith.constant dense<0.000000e+00> : vector<128xf32>
    %38 = vector.multi_reduction <add>, %37, %cst_10 [0] : vector<1x128xf32> to vector<128xf32>
    %39 = vector.shape_cast %38 : vector<128xf32> to vector<1x128xf32>
    %c3 = arith.constant 3 : index
    %40 = memref.load %arg1[%c3] : memref<8xf32, #tpu.memory_space<smem>>
    %41 = vector.broadcast %40 : f32 to vector<1x128xf32>
    %42 = arith.mulf %1, %41 : vector<1x128xf32>
    %c7 = arith.constant 7 : index
    %43 = memref.load %arg1[%c7] : memref<8xf32, #tpu.memory_space<smem>>
    %44 = vector.broadcast %43 : f32 to vector<1x128xf32>
    %45 = arith.mulf %3, %44 : vector<1x128xf32>
    %46 = arith.addf %42, %45 : vector<1x128xf32>
    %cst_11 = arith.constant dense<0.000000e+00> : vector<128xf32>
    %47 = vector.multi_reduction <add>, %46, %cst_11 [0] : vector<1x128xf32> to vector<128xf32>
    %48 = vector.shape_cast %47 : vector<128xf32> to vector<1x128xf32>
    %49 = arith.mulf %46, %46 : vector<1x128xf32>
    %cst_12 = arith.constant dense<0.000000e+00> : vector<128xf32>
    %50 = vector.multi_reduction <add>, %49, %cst_12 [0] : vector<1x128xf32> to vector<128xf32>
    %51 = vector.shape_cast %50 : vector<128xf32> to vector<1x128xf32>
    %52 = tpu.concatenate %12, %24, %36, %48, %15, %27, %39, %51 in 0 : vector<1x128xf32>, vector<1x128xf32>, vector<1x128xf32>, vector<1x128xf32>, vector<1x128xf32>, vector<1x128xf32>, vector<1x128xf32>, vector<1x128xf32> -> vector<8x128xf32>
    %c0_13 = arith.constant 0 : index
    %c0_14 = arith.constant 0 : index
    %c0_15 = arith.constant 0 : index
    %53 = vector.load %arg3[%c0_13, %c0_14, %c0_15] : memref<1x8x128xf32, #tpu.memory_space<vmem>>, vector<1x8x128xf32>
    %54 = vector.shape_cast %53 : vector<1x8x128xf32> to vector<8x128xf32>
    %55 = vector.shape_cast %52 : vector<8x128xf32> to vector<1x8x128xf32>
    tpu.vector_store %arg3[%c0_13, %c0_14, %c0_15], %55 {strides = array<i32>} : memref<1x8x128xf32, #tpu.memory_space<vmem>>, vector<1x8x128xf32>,
    return
  }
  func.func @transform_0(%arg0: i32) -> i32 {
    %c0_i32 = arith.constant 0 : i32
    %c0_i32_0 = arith.constant 0 : i32
    return %c0_i32 : i32
  }
  func.func @transform_1(%arg0: i32) -> (i32, i32, i32) {
    %c0_i32 = arith.constant 0 : i32
    %c0_i32_0 = arith.constant 0 : i32
    %c0_i32_1 = arith.constant 0 : i32
    return %c0_i32, %arg0, %c0_i32_0 : i32, i32, i32
  }
  func.func @transform_2(%arg0: i32) -> (i32, i32, i32) {
    %c0_i32 = arith.constant 0 : i32
    %c0_i32_0 = arith.constant 0 : i32
    %c0_i32_1 = arith.constant 0 : i32
    return %arg0, %c0_i32, %c0_i32_0 : i32, i32, i32
  }
}

</mosaic_0001>

<bundles_post_ra>
// kernel: tpu_custom_call.1
= control target key start
LH: loop header
LB: loop body
LE: loop exit
PB: predicated region body
PF: predicated region fallthrough
CT: control target
= control target key end

     0   :  { %7 = vsyncpa [#allocation4], 0  ;;  %s231_s0 = inlined_call_operand.hbm [shape: f32[8], index: 0, kind: input, shape index: {}]   ;;  %s232_s1 = inlined_call_operand.vmem [shape: f32[2,1,128], index: 1, kind: input, shape index: {}]   ;;  %s233_s2 = inlined_call_operand.hbm [shape: f32[1,8,128], index: 2, kind: output, shape index: {}]  }
   0x1   :  { %8 = vsyncpa [#allocation3], 0  ;;  %s148_s11 = scalar_lea.hbm %s231_s0, 16 }
   0x2   :  { %p149_p0 = scmp.ne.s32.totalorder %s231_s0, %s148_s11  ;;  %p152_p1 = scmp.lt.u32.totalorder %s148_s11, %s231_s0 }
   0x4   :  { %p154_p2 = pnand %p152_p1, %p149_p0 }
   0x6   :  { %157 = shalt.err (!%p154_p2)
}
   0x7   :  { %s184_s16 = smov [#allocation2]  }
   0x8   :  { %16 = dma.hbm_to_smem %s231_s0, 16, %s184_s16, [#allocation4]  }
   0x9   :  { %180 = dma.done.wait [#allocation4], 16  }
   0xa   :  { %181 = vsyncadd [#allocation4], 4294967280 }
   0xb   :  { %22 = sfence }
   0xc   :  { %s26_s19 = sld [smem:[#allocation2]]  ;;  %v67_v0 = vlaneseq  ;;  %s139_s20 = sld [smem:[#allocation2 + $0x4]]  ;;  %v23_v2 = vld [vmem:[%s232_s1] sm:$0x1]  ;;  %v138_v3 = vld [vmem:[%s232_s1 + $0x1] sm:$0x1] }
   0xd   :  { %s140_s21 = sld [smem:[#allocation2 + $0x1]]  ;;  %s141_s22 = sld [smem:[#allocation2 + $0x5]]  ;;  %vm108_vm0 = vcmask 1040384   ;;  %vm110_vm1 = vcmask 1041408   ;;  %vm112_vm2 = vcmask 1042432   ;;  %vm114_vm3 = vcmask 1043456  }
   0xe   :  { %s142_s23 = sld [smem:[#allocation2 + $0x2]]  ;;  %s143_s24 = sld [smem:[#allocation2 + $0x6]]  ;;  %v68_v1 = vshrl.u32 %v67_v0, 7  ;;  %vm116_vm4 = vcmask 1044480   ;;  %vm118_vm5 = vcmask 1045504   ;;  %vm120_vm6 = vcmask 1046528  }
   0xf   :  { %s144_s25 = sld [smem:[#allocation2 + $0x3]]  ;;  %s145_s28 = sld [smem:[#allocation2 + $0x7]] }
  0x10   :  { %v69_v8 = vsub.s32 0, %v68_v1  ;;  %s185_s0 = smov [#allocation5]  }
  0x11   :  { %s129_s1 = sshll.u32 %s185_s0, 4  ;;  %s130_s1 = int_to_ptr.vmem [resolvable:$true] %s129_s1 }
  0x12   :  { %v27_v4 = vstv %s26_s19  ;;  %v30_v6 = vstv %s139_s20  ;;  %s158_s3 = scalar_lea.vmem %s130_s1, 128  ;;  %p163_p4 = scmp.lt.s32.totalorder %s130_s1, %s130_s1 }
  0x13   :  { %v28_v5 = vmul.f32 %v27_v4, %v23_v2  ;;  %v37_v7 = vstv %s140_s21  ;;  %v31_v9 = vmul.f32 %v138_v3, %v30_v6  ;;  %v40_v11 = vstv %s141_s22  ;;  %p159_p3 = scmp.ne.s32.totalorder %s130_s1, %s158_s3  ;;  %p164_p5 = scmp.lt.s32.totalorder %s158_s3, %s158_s3 }
  0x14   :  { %v38_v10 = vmul.f32 %v37_v7, %v23_v2  ;;  %v47_v12 = vstv %s142_s23  ;;  %v41_v13 = vmul.f32 %v138_v3, %v40_v11  ;;  %v50_v15 = vstv %s143_s24 }
  0x15   :  { %v48_v14 = vmul.f32 %v47_v12, %v23_v2  ;;  %v57_v16 = vstv %s144_s25  ;;  %v32_v17 = vadd.f32 %v31_v9, %v28_v5  ;;  %v51_v18 = vmul.f32 %v138_v3, %v50_v15  ;;  %p165_p6 = por %p164_p5, %p163_p4 }
  0x16   :  { %v58_v19 = vmul.f32 %v57_v16, %v23_v2  ;;  %v60_v20 = vstv %s145_s28  ;;  %v42_v21 = vadd.f32 %v41_v13, %v38_v10 }
  0x17   :  { %v61_v22 = vmul.f32 %v138_v3, %v60_v20  ;;  %v34_v23 = vmul.f32 %v32_v17, %v32_v17  ;;  %v52_v24 = vadd.f32 %v51_v18, %v48_v14  ;;  %p166_p7 = pnand %p165_p6, %p159_p3 }
  0x18   :  { %v44_v25 = vmul.f32 %v42_v21, %v42_v21  ;;  %v70_v27 = vrot.slane %v42_v21, %v69_v8 }
  0x19   :  { %v62_v26 = vadd.f32 %v61_v22, %v58_v19  ;;  %v54_v28 = vmul.f32 %v52_v24, %v52_v24  ;;  %v76_v29 = vrot.slane %v52_v24, %v69_v8  ;;  %v88_v30 = vrot.slane %v34_v23, %v69_v8 }
  0x1a   :  { %v94_v33 = vrot.slane %v44_v25, %v69_v8  ;;  %v109_v34 = vsel %vm108_vm0, %v32_v17, %v70_v27 }
  0x1b   :  { %v64_v31 = vmul.f32 %v62_v26, %v62_v26  ;;  %v82_v32 = vrot.slane %v62_v26, %v69_v8  ;;  %v100_v35 = vrot.slane %v54_v28, %v69_v8  ;;  %v111_v36 = vsel %vm110_vm1, %v109_v34, %v76_v29 }
  0x1d   :  { %v106_v37 = vrot.slane %v64_v31, %v69_v8  ;;  %v113_v38 = vsel %vm112_vm2, %v111_v36, %v82_v32 }
  0x1e   :  { %v115_v39 = vsel %vm114_vm3, %v113_v38, %v88_v30 }
  0x1f   :  { %v117_v40 = vsel %vm116_vm4, %v115_v39, %v94_v33 }
  0x20   :  { %v119_v41 = vsel %vm118_vm5, %v117_v40, %v100_v35 }
  0x21   :  { %v121_v42 = vsel %vm120_vm6, %v119_v41, %v106_v37 }
  0x22   :  { %122 = vst [vmem:[#allocation5] sm:$0xff] %v121_v42 }
  0x23   :  { %169 = shalt.err (!%p166_p7)
}
  0x24   :  { %s170_s6 = scalar_lea.hbm %s233_s2, 128 }
  0x25   :  { %p171_p8 = scmp.ne.s32.totalorder %s233_s2, %s170_s6  ;;  %p174_p9 = scmp.lt.u32.totalorder %s170_s6, %s233_s2 }
  0x27   :  { %p176_p10 = pnand %p174_p9, %p171_p8 }
  0x29   :  { %179 = shalt.err (!%p176_p10)
}
  0x2a   :  { %132 = dma.vmem_to_hbm [thread:$0]  %s130_s1, 128, %s233_s2, [#allocation3]  }
  0x2b   :  { %182 = dma.done.wait [#allocation3], 128  }
  0x2c   :  { %183 = vsyncadd [#allocation3], 4294967168 }
  0x2d   :  { %136 = vsyncpa [#allocation3], 1 }
  0x2e   :  { %137 = vsyncpa [#allocation4], 1 }

</bundles_post_ra>
